<compile_context>
chip_gen: v7x
topology: tpu7x:2x2x1
jax: 0.10.0
libtpu: 0.0.40
codegen_flags: <defaults>
</compile_context>

<pallas_src>
import functools

import jax
import jax.numpy as jnp
from jax import lax
from jax.experimental import pallas as pl
from jax.experimental.pallas import tpu as pltpu


def _sobel_kernel(x_ref, out_ref, *, H, W):
    """One grid step: TB row-major-flattened single-channel images.

    x_ref  : (TB, H*W)    flattened images (native dtype)
    out_ref: (TB, 2*H*W)  [:, :H*W] = Gx, [:, H*W:] = Gy   (float32)
    """
    HW = H * W
    x = x_ref[...].astype(jnp.float32)

    lane = lax.broadcasted_iota(jnp.int32, x.shape, 1)
    if (W & (W - 1)) == 0:            # W power of two -> cheap bitwise AND
        col = lane & (W - 1)
    else:
        col = lane % W

    # Vertical neighbours: circular lane shift by +-W within each per-sublane
    # image; rows outside the image contribute zero (Conv2d zero padding).
    # pltpu.roll requires non-negative shifts, so "-W" is written as HW - W.
    up = jnp.where(lane >= W, pltpu.roll(x, W, axis=1), 0.0)            # x[r-1, c]
    dn = jnp.where(lane < HW - W, pltpu.roll(x, HW - W, axis=1), 0.0)   # x[r+1, c]

    v = (up + dn) + (x + x)    # vertical [1, 2, 1] smoothing
    d = up - dn                # vertical [1, 0, -1] difference

    # Horizontal neighbours: circular lane shift by +-1; the wrap across each
    # image's left/right border is killed by the column predicates.
    not_left = col != 0
    not_right = col != (W - 1)
    vl = jnp.where(not_left, pltpu.roll(v, 1, axis=1), 0.0)             # v[r, c-1]
    vr = jnp.where(not_right, pltpu.roll(v, HW - 1, axis=1), 0.0)       # v[r, c+1]
    dl = jnp.where(not_left, pltpu.roll(d, 1, axis=1), 0.0)             # d[r, c-1]
    dr = jnp.where(not_right, pltpu.roll(d, HW - 1, axis=1), 0.0)       # d[r, c+1]

    # edge_kx = [[1,0,-1],[2,0,-2],[1,0,-1]],  edge_ky = [[1,2,1],[0,0,0],[-1,-2,-1]]
    out_ref[:, 0:HW] = vl - vr                      # Gx
    out_ref[:, HW:2 * HW] = (dl + dr) + (d + d)     # Gy


def _vmem_budget_and_phys():
    """Generation-aware per-step block budget and physical VMEM size."""
    try:
        phys = int(pltpu.get_tpu_info().vmem_capacity_bytes)
    except Exception:
        phys = 64 << 20   # conservative fallback (v7x per-core VMEM)
    budget = min(phys // 4, 24 << 20)   # leaves ample headroom on every generation
    return budget, phys


def _pick_batch_tile(N, HW, in_itemsize, budget, min_steps=4):
    """Images per grid step (sublane block dim: a multiple of 8 dividing N)."""
    if N % 8 != 0 or N <= 8:
        # Block sublane dim must be a multiple of 8 or equal the full batch dim.
        # TODO(synk): pad N to a multiple of 8 wrapper-side for large ragged batches.
        return N
    # Double-buffered input block + double-buffered f32 (2*HW) output block.
    per_img = 2 * in_itemsize * HW + 2 * 2 * 4 * HW
    cands = [tb for tb in range(8, N + 1, 8)
             if N % tb == 0 and tb * per_img <= budget and N // tb >= min_steps]
    if not cands:
        return 8
    even = [tb for tb in cands if (N // tb) % 2 == 0]   # v7x: 2 TensorCores
    return max(even) if even else max(cands)


@jax.jit
def sobel(x):
    """x: (N, 1, H, W) float -> (N, 2, H, W) float32 [Gx, Gy] (zero-padded conv)."""
    N, C, H, W = x.shape
    assert C == 1, "Sobel expects a single input channel"
    HW = H * W

    xf = x.reshape(N, HW)                            # free collapse of minor dims

    budget, phys = _vmem_budget_and_phys()
    TB = _pick_batch_tile(N, HW, xf.dtype.itemsize, budget)
    # TODO(synk): for very large images (whole-image lane rows overflow scoped
    # VMEM, esp. v7x's 64 MiB) tile H with a 2-row halo instead of full images.
    # TODO(synk): if consumers accept bf16, emit Gx/Gy as bf16 to cut write traffic.

    # Explicit scoped-VMEM limit sized to the chosen (double-buffered) blocks.
    needed = 2 * xf.dtype.itemsize * TB * HW + 2 * 2 * 4 * TB * HW
    vmem_limit = int(min(phys * 3 // 4, max(needed + (2 << 20), 16 << 20)))

    out_flat = pl.pallas_call(
        functools.partial(_sobel_kernel, H=H, W=W),
        out_shape=jax.ShapeDtypeStruct((N, 2 * HW), jnp.float32),
        grid=(N // TB,),
        in_specs=[pl.BlockSpec((TB, HW), lambda n: (n, 0))],     # TB flattened images
        out_specs=pl.BlockSpec((TB, 2 * HW), lambda n: (n, 0)),  # lane-dense Gx|Gy slab
        compiler_params=pltpu.CompilerParams(
            dimension_semantics=("parallel",),
            vmem_limit_bytes=vmem_limit),
    )(xf)

    # NOTE: fully lane-dense stores need H*W % 128 == 0; other sizes are still
    # correct (masked stores).  TODO(synk): pad W wrapper-side when HW % 128 != 0.
    return out_flat.reshape(N, 2, H, W)              # free split of minor dims


def _sobel_reference(x):
    """Direct pure-JAX reference: Conv2d cross-correlation with the fixed Sobel
    taps and zero padding."""
    N, C, H, W = x.shape
    xp = jnp.pad(x[:, 0].astype(jnp.float32), ((0, 0), (1, 1), (1, 1)))
    tl = xp[:, 0:H,     0:W]; tc = xp[:, 0:H,     1:W + 1]; tr = xp[:, 0:H,     2:W + 2]
    ml = xp[:, 1:H + 1, 0:W];                                mr = xp[:, 1:H + 1, 2:W + 2]
    bl = xp[:, 2:H + 2, 0:W]; bc = xp[:, 2:H + 2, 1:W + 1]; br = xp[:, 2:H + 2, 2:W + 2]
    gx = (tl + 2.0 * ml + bl) - (tr + 2.0 * mr + br)
    gy = (tl + 2.0 * tc + tr) - (bl + 2.0 * bc + br)
    return jnp.stack([gx, gy], axis=1)


if __name__ == "__main__":
    key = jax.random.PRNGKey(0)
    N, C, H, W = 16, 1, 16, 16                 # Conv2d(1, 2, ...) => 1 input channel
    x = jax.random.normal(key, (N, C, H, W), dtype=jnp.float32)

    out = jax.block_until_ready(sobel(x))
    ref = jax.block_until_ready(_sobel_reference(x))

    assert out.shape == (N, 2, H, W)
    assert out.dtype == jnp.float32
    assert jnp.allclose(out, ref, atol=1e-4, rtol=1e-4), \
        float(jnp.max(jnp.abs(out - ref)))

    print("KERNEL_OK")
</pallas_src>

<mosaic_0001>
module attributes {stable_mosaic.version = 11 : i64} {
  func.func @_sobel_kernel(%arg0: i32, %arg1: memref<8x256xf32, #tpu.memory_space<vmem>>, %arg2: memref<8x512xf32, #tpu.memory_space<vmem>>) attributes {dimension_semantics = [#tpu.dimension_semantics<parallel>], iteration_bounds = array<i64: 2>, scalar_prefetch = 0 : i64, scratch_operands = 0 : i64, tpu.core_type = #tpu.core_type<tc>, window_params = [{transform_indices = @transform_0, window_bounds = array<i64: 8, 256>}, {transform_indices = @transform_1, window_bounds = array<i64: 8, 512>}]} {
    %c0 = arith.constant 0 : index
    %c0_0 = arith.constant 0 : index
    %0 = vector.load %arg1[%c0, %c0_0] : memref<8x256xf32, #tpu.memory_space<vmem>>, vector<8x256xf32>
    %1 = tpu.iota {dimensions = array<i32: 1>} : vector<8x256xi32>
    %c15_i32 = arith.constant 15 : i32
    %2 = vector.broadcast %c15_i32 : i32 to vector<8x256xi32>
    %3 = arith.andi %1, %2 : vector<8x256xi32>
    %c16_i32 = arith.constant 16 : i32
    %4 = vector.broadcast %c16_i32 : i32 to vector<8x256xi32>
    %5 = arith.cmpi sge, %1, %4 : vector<8x256xi32>
    %c16_i32_1 = arith.constant 16 : i32
    %6 = tpu.dynamic_rotate %0 by %c16_i32_1 dim 1 : vector<8x256xf32>, i32 -> vector<8x256xf32>
    %cst = arith.constant 0.000000e+00 : f32
    %7 = vector.broadcast %cst : f32 to vector<8x256xf32>
    %8 = arith.select %5, %6, %7 : vector<8x256xi1>, vector<8x256xf32>
    %c240_i32 = arith.constant 240 : i32
    %9 = vector.broadcast %c240_i32 : i32 to vector<8x256xi32>
    %10 = arith.cmpi slt, %1, %9 : vector<8x256xi32>
    %c240_i32_2 = arith.constant 240 : i32
    %11 = tpu.dynamic_rotate %0 by %c240_i32_2 dim 1 : vector<8x256xf32>, i32 -> vector<8x256xf32>
    %cst_3 = arith.constant 0.000000e+00 : f32
    %12 = vector.broadcast %cst_3 : f32 to vector<8x256xf32>
    %13 = arith.select %10, %11, %12 : vector<8x256xi1>, vector<8x256xf32>
    %14 = arith.addf %8, %13 : vector<8x256xf32>
    %15 = arith.addf %0, %0 : vector<8x256xf32>
    %16 = arith.addf %14, %15 : vector<8x256xf32>
    %17 = arith.subf %8, %13 : vector<8x256xf32>
    %c0_i32 = arith.constant 0 : i32
    %18 = vector.broadcast %c0_i32 : i32 to vector<8x256xi32>
    %19 = arith.cmpi ne, %3, %18 : vector<8x256xi32>
    %c15_i32_4 = arith.constant 15 : i32
    %20 = vector.broadcast %c15_i32_4 : i32 to vector<8x256xi32>
    %21 = arith.cmpi ne, %3, %20 : vector<8x256xi32>
    %c1_i32 = arith.constant 1 : i32
    %22 = tpu.dynamic_rotate %16 by %c1_i32 dim 1 : vector<8x256xf32>, i32 -> vector<8x256xf32>
    %cst_5 = arith.constant 0.000000e+00 : f32
    %23 = vector.broadcast %cst_5 : f32 to vector<8x256xf32>
    %24 = arith.select %19, %22, %23 : vector<8x256xi1>, vector<8x256xf32>
    %c255_i32 = arith.constant 255 : i32
    %25 = tpu.dynamic_rotate %16 by %c255_i32 dim 1 : vector<8x256xf32>, i32 -> vector<8x256xf32>
    %cst_6 = arith.constant 0.000000e+00 : f32
    %26 = vector.broadcast %cst_6 : f32 to vector<8x256xf32>
    %27 = arith.select %21, %25, %26 : vector<8x256xi1>, vector<8x256xf32>
    %c1_i32_7 = arith.constant 1 : i32
    %28 = tpu.dynamic_rotate %17 by %c1_i32_7 dim 1 : vector<8x256xf32>, i32 -> vector<8x256xf32>
    %cst_8 = arith.constant 0.000000e+00 : f32
    %29 = vector.broadcast %cst_8 : f32 to vector<8x256xf32>
    %30 = arith.select %19, %28, %29 : vector<8x256xi1>, vector<8x256xf32>
    %c255_i32_9 = arith.constant 255 : i32
    %31 = tpu.dynamic_rotate %17 by %c255_i32_9 dim 1 : vector<8x256xf32>, i32 -> vector<8x256xf32>
    %cst_10 = arith.constant 0.000000e+00 : f32
    %32 = vector.broadcast %cst_10 : f32 to vector<8x256xf32>
    %33 = arith.select %21, %31, %32 : vector<8x256xi1>, vector<8x256xf32>
    %34 = arith.subf %24, %27 : vector<8x256xf32>
    %c0_11 = arith.constant 0 : index
    %c0_12 = arith.constant 0 : index
    %35 = vector.load %arg2[%c0_11, %c0_12] : memref<8x512xf32, #tpu.memory_space<vmem>>, vector<8x256xf32>
    tpu.vector_store %arg2[%c0_11, %c0_12], %34 {strides = array<i32>} : memref<8x512xf32, #tpu.memory_space<vmem>>, vector<8x256xf32>,
    %36 = arith.addf %30, %33 : vector<8x256xf32>
    %37 = arith.addf %17, %17 : vector<8x256xf32>
    %38 = arith.addf %36, %37 : vector<8x256xf32>
    %c0_13 = arith.constant 0 : index
    %c256 = arith.constant 256 : index
    %39 = vector.load %arg2[%c0_13, %c256] : memref<8x512xf32, #tpu.memory_space<vmem>>, vector<8x256xf32>
    tpu.vector_store %arg2[%c0_13, %c256], %38 {strides = array<i32>} : memref<8x512xf32, #tpu.memory_space<vmem>>, vector<8x256xf32>,
    return
  }
  func.func @transform_0(%arg0: i32) -> (i32, i32) {
    %c0_i32 = arith.constant 0 : i32
    %c0_i32_0 = arith.constant 0 : i32
    return %arg0, %c0_i32 : i32, i32
  }
  func.func @transform_1(%arg0: i32) -> (i32, i32) {
    %c0_i32 = arith.constant 0 : i32
    %c0_i32_0 = arith.constant 0 : i32
    return %arg0, %c0_i32 : i32, i32
  }
}

</mosaic_0001>

<bundles_post_ra>
// kernel: sobel.1
= control target key start
LH: loop header
LB: loop body
LE: loop exit
PB: predicated region body
PF: predicated region fallthrough
CT: control target
= control target key end

     0   :  { %s306_s6 = smov 0   ;;  %s384_s0 = inlined_call_operand.vmem [shape: f32[16,256], index: 0, kind: input, shape index: {}]   ;;  %s385_s1 = inlined_call_operand.vmem [shape: f32[16,512], index: 1, kind: output, shape index: {}]  }
   0x1 LB: > { %s259_s7 = sadd.s32 4294967295, %s290_s6   ;;  %p263_p0 = scmp.ge.s32.totalorder %s290_s6, 1  ;;  %s290_s6 = sphi %s306_s6, %s11_s6  }
   0x2   : > { %p87_p1 = scmp.lt.s32.totalorder %s290_s6, 3 }
   0x4   : > { %p88_p2 = pnand %p263_p0, %p87_p1 }
   0x5   : > { %p107_p3 = scmp.lt.s32.totalorder (!%p88_p2), %s259_s7, 1  ;;  %s292_s12 = smov (!%p88_p2), 112   ;;  %v119_v2 = vlaneseq (!%p88_p2) }
   0x6   : > { %91 = sbr.rel (%p88_p2) target bundleno = 272 (0x110), region = 24  ;;  %s293_s13 = smov (!%p88_p2), 16  }
   0x7   : > { %v320_v3 = vand.u32 (!%p88_p2), 127, %v119_v2  ;;  %s294_s14 = smov (!%p88_p2), 1   ;;  %s295_s15 = smov (!%p88_p2), 127  }
   0x9   : > { %v121_v4 = vadd.s32 (!%p88_p2), 128, %v320_v3  ;;  %vm141_vm0 = vcmp.lt.s32.totalorder (!%p88_p2), %v320_v3, 112  ;;  %vm130_vm1 = vcmp.lt.s32.totalorder (!%p88_p2), %v320_v3, 16  ;;  %vm124_vm3 = vcmp.ge.s32.totalorder (!%p88_p2), %v320_v3, 16 }
   0xa   : > { %v122_v23 = vand.u32 (!%p88_p2), 15, %v320_v3  ;;  %vm162_vm4 = vcmp.lt.s32.totalorder (!%p88_p2), %v320_v3, 1  ;;  %vm171_vm7 = vcmp.lt.s32.totalorder (!%p88_p2), %v320_v3, 127 }
   0xb   : > { %vm136_vm2 = vcmp.lt.s32.totalorder (!%p88_p2), %v121_v4, 240  ;;  %v123_v24 = vand.u32 (!%p88_p2), 15, %v121_v4 }
   0xc   : > { %vm328_vm5 = vcmp.ne.s32.totalorder (!%p88_p2), %v122_v23, 0  ;;  %vm341_vm8 = vcmp.ne.s32.totalorder (!%p88_p2), %v122_v23, 15 }
   0xd   : > { %s395_s7 = smov (!%p107_p3, %s259_s7), 1  ;;  %vm332_vm6 = vcmp.ne.s32.totalorder %v123_v24, 0  ;;  %vm345_vm9 = vcmp.ne.s32.totalorder %v123_v24, 15 }
   0xe   : > { %s270_s8 = sshll.u32 %s395_s7, 4  ;;  %s271_s16 = sshll.u32 %s395_s7, 5 }
   0xf   : > { %s111_s11 = scalar_lea.vmem %s384_s0, %s270_s8  ;;  %s116_s19 = scalar_lea.vmem %s385_s1, %s271_s16 }
  0x10   : > { %v117_v0 = vld [vmem:[%s111_s11] sm:$0xff]  ;;  %v118_v1 = vld [vmem:[%s111_s11 + $0x8] sm:$0xff] }
  0x11   : > { %137 = vrot.lane.b32.xlu1 %v117_v0, %s292_s12  ;;  %126 = vrot.lane.b32.xlu0 %v117_v0, %s293_s13  ;;  %v148_v17 = vadd.f32 %v117_v0, %v117_v0  ;;  %v149_v18 = vadd.f32 %v118_v1, %v118_v1 }
  0x15   : > { %139 = vrot.lane.b32.xlu1 %v118_v1, %s292_s12  ;;  %128 = vrot.lane.b32.xlu0 %v118_v1, %s293_s13 }
  0x83   : > { %v138_v5 = vpop.permute.xlu1 %137  ;;  %v127_v6 = vpop.permute.xlu0 %126 }
  0x87   : > { %v140_v7 = vpop.permute.xlu1 %139  ;;  %v129_v8 = vpop.permute.xlu0 %128 }
  0x88   : > { %v142_v9 = vsel %vm141_vm0, %v138_v5, %v140_v7  ;;  %v143_v10 = vsel %vm141_vm0, %v140_v7, %v138_v5  ;;  %v131_v11 = vsel %vm130_vm1, %v127_v6, %v129_v8  ;;  %v132_v12 = vsel %vm130_vm1, %v129_v8, %v127_v6 }
  0x89   : > { %v145_v13 = vsel %vm136_vm2, %v143_v10, 0.0  ;;  %v133_v14 = vsel %vm124_vm3, %v132_v12, 0.0 }
  0x8a   : > { %v152_v15 = vsub.f32 %v133_v14, %v142_v9  ;;  %v153_v16 = vsub.f32 %v131_v11, %v145_v13  ;;  %v146_v19 = vadd.f32 %v142_v9, %v133_v14  ;;  %v147_v20 = vadd.f32 %v145_v13, %v131_v11 }
  0x8c   : > { %176 = vrot.lane.b32.xlu0 %v152_v15, %s294_s14  ;;  %178 = vrot.lane.b32.xlu1 %v153_v16, %s294_s14  ;;  %v151_v21 = vadd.f32 %v149_v18, %v147_v20  ;;  %v150_v22 = vadd.f32 %v148_v17, %v146_v19  ;;  %v199_v41 = vadd.f32 %v153_v16, %v153_v16 }
  0x8d   : > { %v198_v42 = vadd.f32 %v152_v15, %v152_v15 }
  0x90   : > { %184 = vrot.lane.b32.xlu0 %v152_v15, %s295_s15  ;;  %186 = vrot.lane.b32.xlu1 %v153_v16, %s295_s15 }
  0x94   : > { %160 = vrot.lane.b32.xlu1 %v151_v21, %s294_s14  ;;  %158 = vrot.lane.b32.xlu0 %v150_v22, %s294_s14 }
  0x98   : > { %169 = vrot.lane.b32.xlu1 %v151_v21, %s295_s15  ;;  %167 = vrot.lane.b32.xlu0 %v150_v22, %s295_s15 }
  0xfe   : > { %v177_v25 = vpop.permute.xlu0 %176  ;;  %v179_v26 = vpop.permute.xlu1 %178 }
  0xff   : > { %v180_v29 = vsel %vm162_vm4, %v177_v25, %v179_v26  ;;  %v181_v30 = vsel %vm162_vm4, %v179_v26, %v177_v25 }
 0x100   : > { %v182_v37 = vsel %vm328_vm5, %v181_v30, 0.0  ;;  %v183_v38 = vsel %vm332_vm6, %v180_v29, 0.0 }
 0x102   : > { %v185_v33 = vpop.permute.xlu0 %184  ;;  %v187_v34 = vpop.permute.xlu1 %186 }
 0x103   : > { %v188_v35 = vsel %vm171_vm7, %v185_v33, %v187_v34  ;;  %v189_v36 = vsel %vm171_vm7, %v187_v34, %v185_v33 }
 0x104   : > { %v190_v39 = vsel %vm341_vm8, %v188_v35, 0.0  ;;  %v191_v40 = vsel %vm345_vm9, %v189_v36, 0.0 }
 0x105   : > { %v196_v43 = vadd.f32 %v190_v39, %v182_v37  ;;  %v197_v44 = vadd.f32 %v191_v40, %v183_v38 }
 0x106   : > { %v161_v45 = vpop.permute.xlu1 %160  ;;  %v159_v46 = vpop.permute.xlu0 %158 }
 0x107   : > { %v200_v47 = vadd.f32 %v198_v42, %v196_v43  ;;  %v201_v48 = vadd.f32 %v199_v41, %v197_v44  ;;  %v163_v49 = vsel %vm162_vm4, %v159_v46, %v161_v45  ;;  %v164_v50 = vsel %vm162_vm4, %v161_v45, %v159_v46 }
 0x108   : > { %v165_v55 = vsel %vm328_vm5, %v164_v50, 0.0  ;;  %v166_v56 = vsel %vm332_vm6, %v163_v49, 0.0 }
 0x109   : > { %202 = vst [vmem:[%s116_s19 + $0x10] sm:$0xff] %v200_v47  ;;  %203 = vst [vmem:[%s116_s19 + $0x18] sm:$0xff] %v201_v48 }
 0x10a   : > { %v170_v51 = vpop.permute.xlu1 %169  ;;  %v168_v52 = vpop.permute.xlu0 %167 }
 0x10b   : > { %v172_v53 = vsel %vm171_vm7, %v168_v52, %v170_v51  ;;  %v173_v54 = vsel %vm171_vm7, %v170_v51, %v168_v52 }
 0x10c   : > { %v174_v57 = vsel %vm341_vm8, %v172_v53, 0.0  ;;  %v175_v58 = vsel %vm345_vm9, %v173_v54, 0.0 }
 0x10d   : > { %v192_v59 = vsub.f32 %v165_v55, %v174_v57  ;;  %v193_v60 = vsub.f32 %v166_v56, %v175_v58 }
 0x10f   : > { %194 = vst [vmem:[%s116_s19] sm:$0xff] %v192_v59  ;;  %195 = vst [vmem:[%s116_s19 + $0x8] sm:$0xff] %v193_v60 }
 0x110 PF: > { %s11_s6 = sadd.s32 1, %s290_s6  }
 0x111   : > { %p8_p4 = scmp.ge.s32.totalorder %s11_s6, 4  }
 0x113   :  { %10 = sbr.rel (!%p8_p4) target bundleno = 1 (0x1), region = 54 }

</bundles_post_ra>
